<compile_context>
chip_gen: v7x
topology: tpu7x:2x2x1
jax: 0.10.0
libtpu: 0.0.40
codegen_flags: <defaults>
</compile_context>

<pallas_src>
import math

import jax
import jax.numpy as jnp
from jax import lax
from jax.experimental import pallas as pl
from jax.experimental.pallas import tpu as pltpu


def _round_up(x, m):
    return ((x + m - 1) // m) * m


def _block_bytes(shape, dtype):
    """VMEM footprint of one buffered block, padded to (8, 128) tiles."""
    lead = 1
    for d in shape[:-2]:
        lead *= d
    rows = _round_up(shape[-2], 8)
    cols = _round_up(shape[-1], 128)
    return lead * rows * cols * jnp.dtype(dtype).itemsize


def _vmem_limit(*buf_bytes):
    """Scoped-VMEM request: actual buffers x2 headroom + mosaic scratch."""
    need = 2 * sum(buf_bytes) + (8 << 20)
    return int(min(64 << 20, need))        # stay under v7x physical VMEM


def _choose_tile(n, max_tile):
    """Largest multiple-of-8 tile <= min(n, max_tile); full array if n < 8."""
    if n < 8:
        return n
    return max(8, min(max_tile, (n // 8) * 8))


def _with_single_buffer_fallback(build):
    """build(single_buffer: bool) -> result.

    pl.Buffered(1) single-buffers the grid-invariant operands (halves their
    VMEM); fall back to default double-buffering if this jax build rejects it.
    """
    try:
        return build(True)
    except Exception:
        return build(False)


# ----------------------------------------------------------------------------
# Embedding lookup: out[i] = table[idx[i]]  (batched, table resident in VMEM)
# ----------------------------------------------------------------------------
def _embed_gather_kernel(idx_ref, table_ref, out_ref):
    # idx_ref   : (TILE, 1) int32 block of flattened indices (VMEM)
    # table_ref : (n_style, d_style) bf16 full table, same block every step
    # out_ref   : (TILE, d_style)
    idx = idx_ref[...]                                    # (TILE, 1)
    tile = idx.shape[0]
    n_style = table_ref.shape[0]
    iota = lax.broadcasted_iota(jnp.int32, (tile, n_style), 1)
    onehot = (iota == idx).astype(jnp.bfloat16)           # exact 0/1 in bf16
    out_ref[...] = jnp.dot(
        onehot, table_ref[...], preferred_element_type=jnp.float32
    ).astype(out_ref.dtype)


def style_embeddings_forward(x, table, tile=256):
    """Pallas equivalent of nn.Embedding(n_style, d_style)(x).

    Contract: indices must lie in [0, n_style); out-of-range indices yield
    zero rows instead of raising (unlike torch.nn.Embedding).
    """
    n_style, d_style = table.shape
    flat_idx = x.reshape(-1).astype(jnp.int32)
    n = flat_idx.shape[0]

    TILE = _choose_tile(n, tile)
    grid = (pl.cdiv(n, TILE),)
    idx2d = flat_idx.reshape(n, 1)
    table_bf16 = table.astype(jnp.bfloat16)   # half-size resident VMEM copy

    def run(single_buffer):
        res_kw = {"pipeline_mode": pl.Buffered(1)} if single_buffer else {}
        n_res = 1 if single_buffer else 2
        vmem = _vmem_limit(
            2 * _block_bytes((TILE, 1), jnp.int32),
            n_res * _block_bytes((n_style, d_style), jnp.bfloat16),
            2 * _block_bytes((TILE, d_style), table.dtype),
        )
        return pl.pallas_call(
            _embed_gather_kernel,
            out_shape=jax.ShapeDtypeStruct((n, d_style), table.dtype),
            grid=grid,
            in_specs=[
                pl.BlockSpec((TILE, 1), lambda i: (i, 0)),              # idx
                pl.BlockSpec((n_style, d_style), lambda i: (0, 0),      # table
                             **res_kw),
            ],
            out_specs=pl.BlockSpec((TILE, d_style), lambda i: (i, 0)),
            compiler_params=pltpu.CompilerParams(
                dimension_semantics=("parallel",),
                vmem_limit_bytes=vmem,
            ),
        )(idx2d, table_bf16)

    out_flat = _with_single_buffer_fallback(run)
    return out_flat.reshape(x.shape + (d_style,))


# ----------------------------------------------------------------------------
# Discriminator forward: softmax(x @ W.T + b) fused in one kernel
# ----------------------------------------------------------------------------
def _disc_fwd_kernel(x_ref, w_ref, b_ref, out_ref):
    # x_ref : (TB, C) f32   w_ref : (C, C) bf16 (already W^T)   b_ref : (1, C)
    x = x_ref[...].astype(jnp.bfloat16)          # MXU-native operand dtype
    logits = jnp.dot(x, w_ref[...], preferred_element_type=jnp.float32)
    logits = logits + b_ref[...]
    m = jnp.max(logits, axis=-1, keepdims=True)  # keeps padded rows finite too
    e = jnp.exp(logits - m)
    s = jnp.sum(e, axis=-1, keepdims=True)
    inv = pl.reciprocal(s, approx=True)          # EUP slot; frees the VALU
    out_ref[...] = (e * inv).astype(out_ref.dtype)


def discriminator_forward(x, w, b, tile_b=256):
    """softmax(x @ w.T + b, axis=1) for x of shape (batch, n_classes)."""
    # TODO(synk): for very large n_classes on v7x, add a second grid axis over
    #   output columns (TN multiple of 256) so the resident W tile stays under
    #   the 64 MiB VMEM budget.
    B, C = x.shape
    TB = _choose_tile(B, tile_b)      # default 256 -> >=2 grid steps for big B
    grid = (pl.cdiv(B, TB),)
    wt = w.T.astype(jnp.bfloat16)     # resident (in, out) weights, half-size
    b2 = b.reshape(1, C).astype(jnp.float32)

    def run(single_buffer):
        res_kw = {"pipeline_mode": pl.Buffered(1)} if single_buffer else {}
        n_res = 1 if single_buffer else 2
        vmem = _vmem_limit(
            2 * _block_bytes((TB, C), x.dtype),          # x tiles
            n_res * _block_bytes((C, C), jnp.bfloat16),  # resident W^T
            n_res * _block_bytes((1, C), jnp.float32),   # resident bias
            2 * _block_bytes((TB, C), x.dtype),          # out tiles
        )
        return pl.pallas_call(
            _disc_fwd_kernel,
            out_shape=jax.ShapeDtypeStruct((B, C), x.dtype),
            grid=grid,
            in_specs=[
                pl.BlockSpec((TB, C), lambda i: (i, 0)),            # batch tile
                pl.BlockSpec((C, C), lambda i: (0, 0), **res_kw),   # weights
                pl.BlockSpec((1, C), lambda i: (0, 0), **res_kw),   # bias
            ],
            out_specs=pl.BlockSpec((TB, C), lambda i: (i, 0)),
            compiler_params=pltpu.CompilerParams(
                dimension_semantics=("parallel",),
                vmem_limit_bytes=vmem,
            ),
        )(x, wt, b2)

    return _with_single_buffer_fallback(run)


# ----------------------------------------------------------------------------
# Module ports
# ----------------------------------------------------------------------------
class StyleEmbeddings:
    """JAX/Pallas port of the PyTorch StyleEmbeddings module."""

    def __init__(self, n_style, d_style, key):
        # nn.Embedding default init: N(0, 1)
        self.table = jax.random.normal(key, (n_style, d_style), dtype=jnp.float32)

    def __call__(self, x):
        return style_embeddings_forward(x, self.table)


class Discriminator:
    """JAX/Pallas port of the PyTorch Discriminator module (forward pass)."""

    def __init__(self, n_classes, key):
        self.n_classes = n_classes
        k_emb, k_w, k_b = jax.random.split(key, 3)
        self.embds = StyleEmbeddings(n_classes, 32, k_emb)
        bound = 1.0 / math.sqrt(n_classes)          # nn.Linear default init
        self.w = jax.random.uniform(
            k_w, (n_classes, n_classes), minval=-bound, maxval=bound,
            dtype=jnp.float32)
        self.b = jax.random.uniform(
            k_b, (n_classes,), minval=-bound, maxval=bound, dtype=jnp.float32)

    def __call__(self, x):
        # forward(input) = softmax(fc1(input), dim=1), fused in one kernel.
        return discriminator_forward(x, self.w, self.b)

    def get_fc(self, x):
        # getFc: linear only; trivially small -> plain XLA.
        return x @ self.w.T + self.b

    def get_sig(self, x):
        # getSig: softmax only; trivially small -> plain XLA.
        return jax.nn.softmax(x, axis=1)

    def get_sim(self, latent):
        # getSim: the PyTorch indices are just arange(n_classes) tiled over the
        # batch, so the embedding gather is a broadcast of the table and the
        # bmm collapses to one (B,d)x(d,n) GEMM.  Per perf review this stays in
        # plain XLA (no pallas_call launch, no redundant HBM copies).
        B = latent.shape[0]
        table = self.embds.table
        style = jnp.broadcast_to(
            table[None, :, :], (B, self.n_classes, table.shape[1]))
        dot = latent @ table.T
        return style, dot


if __name__ == "__main__":
    key = jax.random.PRNGKey(0)
    k_model, k_x, k_latent = jax.random.split(key, 3)

    n_classes, batch, d_style = 2, 8, 32

    disc = Discriminator(n_classes, k_model)

    # --- forward: fused linear(bf16 MXU) + softmax kernel ---
    x = jax.random.normal(k_x, (batch, n_classes), dtype=jnp.float32)
    out = jax.block_until_ready(disc(x))
    # Reference uses the same bf16 operand casts the kernel uses.
    ref = jax.nn.softmax(
        jnp.dot(x.astype(jnp.bfloat16), disc.w.T.astype(jnp.bfloat16),
                preferred_element_type=jnp.float32) + disc.b, axis=1)
    assert out.shape == (batch, n_classes)
    assert jnp.allclose(out, ref, atol=5e-3, rtol=5e-3), "forward mismatch"

    # --- embedding lookup kernel (VMEM-resident bf16 table, one-hot @ MXU) ---
    style_idx = jnp.tile(
        jnp.arange(n_classes, dtype=jnp.int32)[None, :, None], (batch, 1, 1))
    emb = jax.block_until_ready(disc.embds(style_idx))
    ref_emb = jnp.take(
        disc.embds.table.astype(jnp.bfloat16).astype(jnp.float32),
        style_idx.reshape(-1), axis=0).reshape(style_idx.shape + (d_style,))
    assert emb.shape == (batch, n_classes, 1, d_style)
    assert jnp.allclose(emb, ref_emb, atol=1e-6), "embedding gather mismatch"

    # --- getSim path: broadcast + single GEMM (plain XLA per perf review) ---
    latent = jax.random.normal(k_latent, (batch, d_style), dtype=jnp.float32)
    style, dot = disc.get_sim(latent)
    dot = jax.block_until_ready(dot)
    ref_style = jnp.broadcast_to(
        disc.embds.table[None], (batch, n_classes, d_style))
    ref_dot = jnp.einsum("bnd,bd->bn", ref_style, latent)
    assert style.shape == (batch, n_classes, d_style)
    assert jnp.allclose(style, ref_style, atol=1e-6), "style broadcast mismatch"
    assert jnp.allclose(dot, ref_dot, atol=1e-4, rtol=1e-4), "similarity mismatch"

    print("KERNEL_OK")
</pallas_src>

<mosaic_0001>
module attributes {stable_mosaic.version = 11 : i64} {
  func.func @_disc_fwd_kernel(%arg0: i32, %arg1: memref<8x2xf32, #tpu.memory_space<vmem>>, %arg2: memref<2x2xbf16, #tpu.memory_space<vmem>>, %arg3: memref<1x2xf32, #tpu.memory_space<vmem>>, %arg4: memref<8x2xf32, #tpu.memory_space<vmem>>) attributes {dimension_semantics = [#tpu.dimension_semantics<parallel>], iteration_bounds = array<i64: 1>, scalar_prefetch = 0 : i64, scratch_operands = 0 : i64, tpu.core_type = #tpu.core_type<tc>, window_params = [{transform_indices = @transform_0, window_bounds = array<i64: 8, 2>}, {pipeline_mode = #tpu.pipeline_mode<synchronous>, transform_indices = @transform_1, window_bounds = array<i64: 2, 2>}, {pipeline_mode = #tpu.pipeline_mode<synchronous>, transform_indices = @transform_2, window_bounds = array<i64: 1, 2>}, {transform_indices = @transform_3, window_bounds = array<i64: 8, 2>}]} {
    %c0 = arith.constant 0 : index
    %c0_0 = arith.constant 0 : index
    %0 = vector.load %arg1[%c0, %c0_0] : memref<8x2xf32, #tpu.memory_space<vmem>>, vector<8x2xf32>
    %1 = arith.truncf %0 : vector<8x2xf32> to vector<8x2xbf16>
    %c0_1 = arith.constant 0 : index
    %c0_2 = arith.constant 0 : index
    %2 = vector.load %arg2[%c0_1, %c0_2] : memref<2x2xbf16, #tpu.memory_space<vmem>>, vector<2x2xbf16>
    %cst = arith.constant dense<0.000000e+00> : vector<8x2xf32>
    %3 = tpu.matmul %1, %2, %cst {dimension_numbers = #tpu.dot_dimension_numbers<[1], [0], [0], [1], [0, 0, 1, 1], [], []>} : vector<8x2xbf16>, vector<2x2xbf16>, vector<8x2xf32> -> vector<8x2xf32>
    %c0_3 = arith.constant 0 : index
    %c0_4 = arith.constant 0 : index
    %4 = vector.load %arg3[%c0_3, %c0_4] : memref<1x2xf32, #tpu.memory_space<vmem>>, vector<1x2xf32>
    %5 = vector.broadcast %4 : vector<1x2xf32> to vector<8x2xf32>
    %6 = arith.addf %3, %5 : vector<8x2xf32>
    %cst_5 = arith.constant dense<0xFF800000> : vector<8xf32>
    %7 = vector.multi_reduction <maximumf>, %6, %cst_5 [1] : vector<8x2xf32> to vector<8xf32>
    %8 = vector.shape_cast %7 : vector<8xf32> to vector<8x1xf32>
    %9 = vector.broadcast %8 : vector<8x1xf32> to vector<8x2xf32>
    %10 = arith.subf %6, %9 : vector<8x2xf32>
    %11 = math.exp %10 : vector<8x2xf32>
    %cst_6 = arith.constant dense<0.000000e+00> : vector<8xf32>
    %12 = vector.multi_reduction <add>, %11, %cst_6 [1] : vector<8x2xf32> to vector<8xf32>
    %13 = vector.shape_cast %12 : vector<8xf32> to vector<8x1xf32>
    %14 = tpu.reciprocal %13 {approx = true} : vector<8x1xf32> -> vector<8x1xf32>
    %15 = vector.broadcast %14 : vector<8x1xf32> to vector<8x2xf32>
    %16 = arith.mulf %11, %15 : vector<8x2xf32>
    %c0_7 = arith.constant 0 : index
    %c0_8 = arith.constant 0 : index
    %17 = vector.load %arg4[%c0_7, %c0_8] : memref<8x2xf32, #tpu.memory_space<vmem>>, vector<8x2xf32>
    tpu.vector_store %arg4[%c0_7, %c0_8], %16 {strides = array<i32>} : memref<8x2xf32, #tpu.memory_space<vmem>>, vector<8x2xf32>,
    return
  }
  func.func @transform_0(%arg0: i32) -> (i32, i32) {
    %c0_i32 = arith.constant 0 : i32
    %c0_i32_0 = arith.constant 0 : i32
    return %arg0, %c0_i32 : i32, i32
  }
  func.func @transform_1(%arg0: i32) -> (i32, i32) {
    %c0_i32 = arith.constant 0 : i32
    %c0_i32_0 = arith.constant 0 : i32
    %c0_i32_1 = arith.constant 0 : i32
    return %c0_i32, %c0_i32_0 : i32, i32
  }
  func.func @transform_2(%arg0: i32) -> (i32, i32) {
    %c0_i32 = arith.constant 0 : i32
    %c0_i32_0 = arith.constant 0 : i32
    %c0_i32_1 = arith.constant 0 : i32
    return %c0_i32, %c0_i32_0 : i32, i32
  }
  func.func @transform_3(%arg0: i32) -> (i32, i32) {
    %c0_i32 = arith.constant 0 : i32
    %c0_i32_0 = arith.constant 0 : i32
    return %arg0, %c0_i32 : i32, i32
  }
}

module attributes {stable_mosaic.version = 11 : i64} {
  func.func @_disc_fwd_kernel(%arg0: i32, %arg1: memref<8x2xf32, #tpu.memory_space<vmem>>, %arg2: memref<2x2xbf16, #tpu.memory_space<vmem>>, %arg3: memref<1x2xf32, #tpu.memory_space<vmem>>, %arg4: memref<8x2xf32, #tpu.memory_space<vmem>>) attributes {dimension_semantics = [#tpu.dimension_semantics<parallel>], iteration_bounds = array<i64: 1>, scalar_prefetch = 0 : i64, scratch_operands = 0 : i64, tpu.core_type = #tpu.core_type<tc>, window_params = [{transform_indices = @transform_0, window_bounds = array<i64: 8, 2>}, {pipeline_mode = #tpu.pipeline_mode<synchronous>, transform_indices = @transform_1, window_bounds = array<i64: 2, 2>}, {pipeline_mode = #tpu.pipeline_mode<synchronous>, transform_indices = @transform_2, window_bounds = array<i64: 1, 2>}, {transform_indices = @transform_3, window_bounds = array<i64: 8, 2>}]} {
    %c0 = arith.constant 0 : index
    %c0_0 = arith.constant 0 : index
    %0 = vector.load %arg1[%c0, %c0_0] : memref<8x2xf32, #tpu.memory_space<vmem>>, vector<8x2xf32>
    %1 = arith.truncf %0 : vector<8x2xf32> to vector<8x2xbf16>
    %c0_1 = arith.constant 0 : index
    %c0_2 = arith.constant 0 : index
    %2 = vector.load %arg2[%c0_1, %c0_2] : memref<2x2xbf16, #tpu.memory_space<vmem>>, vector<2x2xbf16>
    %cst = arith.constant dense<0.000000e+00> : vector<8x2xf32>
    %3 = tpu.matmul %1, %2, %cst {dimension_numbers = #tpu.dot_dimension_numbers<[1], [0], [0], [1], [0, 0, 1, 1], [], []>} : vector<8x2xbf16>, vector<2x2xbf16>, vector<8x2xf32> -> vector<8x2xf32>
    %c0_3 = arith.constant 0 : index
    %c0_4 = arith.constant 0 : index
    %4 = vector.load %arg3[%c0_3, %c0_4] : memref<1x2xf32, #tpu.memory_space<vmem>>, vector<1x2xf32>
    %5 = vector.broadcast %4 : vector<1x2xf32> to vector<8x2xf32>
    %6 = arith.addf %3, %5 : vector<8x2xf32>
    %cst_5 = arith.constant dense<0xFF800000> : vector<8xf32>
    %7 = vector.multi_reduction <maximumf>, %6, %cst_5 [1] : vector<8x2xf32> to vector<8xf32>
    %8 = vector.shape_cast %7 : vector<8xf32> to vector<8x1xf32>
    %9 = vector.broadcast %8 : vector<8x1xf32> to vector<8x2xf32>
    %10 = arith.subf %6, %9 : vector<8x2xf32>
    %11 = math.exp %10 : vector<8x2xf32>
    %cst_6 = arith.constant dense<0.000000e+00> : vector<8xf32>
    %12 = vector.multi_reduction <add>, %11, %cst_6 [1] : vector<8x2xf32> to vector<8xf32>
    %13 = vector.shape_cast %12 : vector<8xf32> to vector<8x1xf32>
    %14 = tpu.reciprocal %13 {approx = true} : vector<8x1xf32> -> vector<8x1xf32>
    %15 = vector.broadcast %14 : vector<8x1xf32> to vector<8x2xf32>
    %16 = arith.mulf %11, %15 : vector<8x2xf32>
    %c0_7 = arith.constant 0 : index
    %c0_8 = arith.constant 0 : index
    %17 = vector.load %arg4[%c0_7, %c0_8] : memref<8x2xf32, #tpu.memory_space<vmem>>, vector<8x2xf32>
    tpu.vector_store %arg4[%c0_7, %c0_8], %16 {strides = array<i32>} : memref<8x2xf32, #tpu.memory_space<vmem>>, vector<8x2xf32>,
    return
  }
  func.func @transform_0(%arg0: i32) -> (i32, i32) {
    %c0_i32 = arith.constant 0 : i32
    %c0_i32_0 = arith.constant 0 : i32
    return %arg0, %c0_i32 : i32, i32
  }
  func.func @transform_1(%arg0: i32) -> (i32, i32) {
    %c0_i32 = arith.constant 0 : i32
    %c0_i32_0 = arith.constant 0 : i32
    %c0_i32_1 = arith.constant 0 : i32
    return %c0_i32, %c0_i32_0 : i32, i32
  }
  func.func @transform_2(%arg0: i32) -> (i32, i32) {
    %c0_i32 = arith.constant 0 : i32
    %c0_i32_0 = arith.constant 0 : i32
    %c0_i32_1 = arith.constant 0 : i32
    return %c0_i32, %c0_i32_0 : i32, i32
  }
  func.func @transform_3(%arg0: i32) -> (i32, i32) {
    %c0_i32 = arith.constant 0 : i32
    %c0_i32_0 = arith.constant 0 : i32
    return %arg0, %c0_i32 : i32, i32
  }
}

</mosaic_0001>

<bundles_post_ra>
// kernel: tpu_custom_call.1
= control target key start
LH: loop header
LB: loop body
LE: loop exit
PB: predicated region body
PF: predicated region fallthrough
CT: control target
= control target key end

     0   :  { %vm29_vm0 = vcmask 1040384   ;;  %v105_v0 = vmov 0.0   ;;  %vm106_vm1 = vmmov 0   ;;  %vm25_vm2 = vcmask 15360   ;;  %s143_s1 = inlined_call_operand.vmem [shape: bf16[2,2], index: 1, kind: input, shape index: {}]   ;;  %s144_s0 = inlined_call_operand.vmem [shape: f32[8,2], index: 0, kind: input, shape index: {}]   ;;  %s145_s2 = inlined_call_operand.vmem [shape: f32[1,2], index: 2, kind: input, shape index: {}]   ;;  %s146_s3 = inlined_call_operand.vmem [shape: f32[8,2], index: 3, kind: output, shape index: {}]  }
   0x1   :  { %93 = vmatprep.subr.bf16.mxu0 %v105_v0  ;;  %v17_v1 = vld [vmem:[%s143_s1] sm:$0x1]  ;;  %95 = vmatprep.mubr.msk.bf16.mxu0 %vm106_vm1, %v105_v0 }
   0x2   :  { %v15_v2 = vld [vmem:[%s144_s0] sm:$0xff]  ;;  %v31_v3 = vsel %vm29_vm0, %v17_v1, 0 }
   0x3   :  { %v16_v4 = vpack.c.bf16 %v15_v2, %v15_v2  ;;  %94 = vmatpush3.bf16.msra.mxu0 %v31_v3  ;;  %v89_v5 = vld [vmem:[%s145_s2] ss:$0 sm:$0xff] }
   0x6   :  { %96 = vmatmul.mubr.msk.bf16.vlgmr.msra.gmra.mrb[0].mxu0 %vm25_vm2, %v16_v4 }
  0xd9   :  { %v67_v6 = vpop.f32.mrb[0].mxu0 }
  0xda   :  { %v68_v7 = vadd.f32 %v89_v5, %v67_v6  ;;  %v97_v8 = vpop.f32.mrb[1].mxu0 }
  0xdb   :  { %v70_v9 = vpop.f32.mrb[2].mxu0 }
  0xdc   :  { %v98_v10 = vpop.f32.mrb[3].mxu0  ;;  %v73_v11 = vsel %vm25_vm2, %v68_v7, -inf }
  0xdd   :  { %74 = vmax.xlane.f32.xlu0 %v73_v11 }
 0x16a   :  { %v75_v12 = vpop.xlane.xlu0 %74 }
 0x16b   :  { %v76_v13 = vsub.f32 %v68_v7, %v75_v12 }
 0x16d   :  { %v77_v14 = vmul.f32 1.442695, %v76_v13 }
 0x16f   :  { %101 = vpow2.f32 %v77_v14 }
 0x179   :  { %v102_v15 = vpop.eup %101 }
 0x17a   :  { %v79_v16 = vsel %vm25_vm2, %v102_v15, 0.0 }
 0x17b   :  { %80 = vadd.xlane.f32.xlu0 %v79_v16 }
 0x208   :  { %v81_v17 = vpop.xlane.xlu0 %80 }
 0x209   :  { %103 = vrcp.f32 %v81_v17 }
 0x213   :  { %v104_v18 = vpop.eup %103 }
 0x214   :  { %v83_v19 = vmul.f32 %v104_v18, %v102_v15 }
 0x216   :  { %84 = vst.msk [vmem:[%s146_s3] sm:$0xff] %vm25_vm2, %v83_v19 }

// kernel: tpu_custom_call.1
= control target key start
LH: loop header
LB: loop body
LE: loop exit
PB: predicated region body
PF: predicated region fallthrough
CT: control target
= control target key end

     0   :  { %vm29_vm0 = vcmask 1040384   ;;  %v105_v0 = vmov 0.0   ;;  %vm106_vm1 = vmmov 0   ;;  %vm25_vm2 = vcmask 15360   ;;  %s143_s1 = inlined_call_operand.vmem [shape: bf16[2,2], index: 1, kind: input, shape index: {}]   ;;  %s144_s0 = inlined_call_operand.vmem [shape: f32[8,2], index: 0, kind: input, shape index: {}]   ;;  %s145_s2 = inlined_call_operand.vmem [shape: f32[1,2], index: 2, kind: input, shape index: {}]   ;;  %s146_s3 = inlined_call_operand.vmem [shape: f32[8,2], index: 3, kind: output, shape index: {}]  }
   0x1   :  { %93 = vmatprep.subr.bf16.mxu0 %v105_v0  ;;  %v17_v1 = vld [vmem:[%s143_s1] sm:$0x1]  ;;  %95 = vmatprep.mubr.msk.bf16.mxu0 %vm106_vm1, %v105_v0 }
   0x2   :  { %v15_v2 = vld [vmem:[%s144_s0] sm:$0xff]  ;;  %v31_v3 = vsel %vm29_vm0, %v17_v1, 0 }
   0x3   :  { %v16_v4 = vpack.c.bf16 %v15_v2, %v15_v2  ;;  %94 = vmatpush3.bf16.msra.mxu0 %v31_v3  ;;  %v89_v5 = vld [vmem:[%s145_s2] ss:$0 sm:$0xff] }
   0x6   :  { %96 = vmatmul.mubr.msk.bf16.vlgmr.msra.gmra.mrb[0].mxu0 %vm25_vm2, %v16_v4 }
  0xd9   :  { %v67_v6 = vpop.f32.mrb[0].mxu0 }
  0xda   :  { %v68_v7 = vadd.f32 %v89_v5, %v67_v6  ;;  %v97_v8 = vpop.f32.mrb[1].mxu0 }
  0xdb   :  { %v70_v9 = vpop.f32.mrb[2].mxu0 }
  0xdc   :  { %v98_v10 = vpop.f32.mrb[3].mxu0  ;;  %v73_v11 = vsel %vm25_vm2, %v68_v7, -inf }
  0xdd   :  { %74 = vmax.xlane.f32.xlu0 %v73_v11 }
 0x16a   :  { %v75_v12 = vpop.xlane.xlu0 %74 }
 0x16b   :  { %v76_v13 = vsub.f32 %v68_v7, %v75_v12 }
 0x16d   :  { %v77_v14 = vmul.f32 1.442695, %v76_v13 }
 0x16f   :  { %101 = vpow2.f32 %v77_v14 }
 0x179   :  { %v102_v15 = vpop.eup %101 }
 0x17a   :  { %v79_v16 = vsel %vm25_vm2, %v102_v15, 0.0 }
 0x17b   :  { %80 = vadd.xlane.f32.xlu0 %v79_v16 }
 0x208   :  { %v81_v17 = vpop.xlane.xlu0 %80 }
 0x209   :  { %103 = vrcp.f32 %v81_v17 }
 0x213   :  { %v104_v18 = vpop.eup %103 }
 0x214   :  { %v83_v19 = vmul.f32 %v104_v18, %v102_v15 }
 0x216   :  { %84 = vst.msk [vmem:[%s146_s3] sm:$0xff] %vm25_vm2, %v83_v19 }

</bundles_post_ra>
